<compile_context>
chip_gen: v7x
topology: tpu7x:2x2x1
jax: 0.10.0
libtpu: 0.0.40
codegen_flags: <defaults>
</compile_context>

<pallas_src>
import functools

import jax
import jax.numpy as jnp
from jax.experimental import pallas as pl
from jax.experimental.pallas import tpu as pltpu

LANES = 128
_TARGET_BYTES_PER_BUF = 2 * 1024 * 1024  # ~2 MiB tile per buffer


def _gmof_kernel(x_ref, o_ref, *, rho_sq):
    # Upcast to f32 so squaring never overflows for low-precision inputs.
    x = x_ref[...].astype(jnp.float32)
    sq = x * x
    # dist = sq / (sq + rho^2);  out = rho^2 * dist   (exact reciprocal to
    # keep 1e-6 tolerance vs. the reference).
    out = (rho_sq * sq) * pl.reciprocal(sq + rho_sq, approx=False)
    o_ref[...] = out.astype(o_ref.dtype)


def _block_rows_for(dtype, rows):
    """Dtype-aware row-block size: big enough to amortize pipeline overhead,
    small enough to fit double-buffered in+out well inside scoped VMEM on all
    generations (v5e 16 MiB default, v7x 64 MiB physical)."""
    itemsize = jnp.dtype(dtype).itemsize
    target = max(8, _TARGET_BYTES_PER_BUF // (LANES * itemsize))  # 4096 f32, 8192 bf16
    if rows <= target:
        return rows  # single full-extent block, one grid step
    return target    # power-of-two multiple of 8 sublanes


@functools.partial(jax.jit, static_argnames=("rho",))
def gmof(residual: jax.Array, rho: float = 1.0) -> jax.Array:
    """Pallas TPU implementation of GMoF.forward."""
    orig_shape = residual.shape
    orig_dtype = residual.dtype
    rho_sq = float(rho) ** 2

    flat = residual.reshape(-1)
    n = flat.shape[0]

    # Pad only when the element count is not lane-aligned; common NCHW shapes
    # (e.g. 2*4*16*16 = 2048) need no pad and no trailing slice at all.
    n_pad = pl.cdiv(n, LANES) * LANES
    if n_pad != n:
        flat = jnp.pad(flat, (0, n_pad - n))
    rows = n_pad // LANES
    x2d = flat.reshape(rows, LANES)

    block_rows = _block_rows_for(orig_dtype, rows)
    grid = (pl.cdiv(rows, block_rows),)

    kernel = functools.partial(_gmof_kernel, rho_sq=rho_sq)
    out2d = pl.pallas_call(
        kernel,
        out_shape=jax.ShapeDtypeStruct((rows, LANES), orig_dtype),
        grid_spec=pltpu.PrefetchScalarGridSpec(
            num_scalar_prefetch=0,
            grid=grid,
            in_specs=[pl.BlockSpec((block_rows, LANES), lambda i: (i, 0))],
            out_specs=pl.BlockSpec((block_rows, LANES), lambda i: (i, 0)),
        ),
        compiler_params=pltpu.CompilerParams(
            dimension_semantics=("parallel",),
            vmem_limit_bytes=32 << 20,
        ),
    )(x2d)

    out_flat = out2d.reshape(-1)
    if n_pad != n:
        out_flat = out_flat[:n]
    return out_flat.reshape(orig_shape)


def gmof_ref(residual: jax.Array, rho: float = 1.0) -> jax.Array:
    """Pure-JAX reference matching the PyTorch module."""
    sq = residual ** 2
    dist = sq / (sq + rho ** 2)
    return (rho ** 2) * dist


if __name__ == "__main__":
    key = jax.random.PRNGKey(0)
    # residual, e.g. NCHW-shaped error map
    x = jax.random.normal(key, (2, 4, 16, 16), dtype=jnp.float32)

    rho = 1.0  # module default: GMoF(rho=1)
    out = gmof(x, rho=rho)
    out = jax.block_until_ready(out)

    ref = gmof_ref(x, rho=rho)
    assert out.shape == x.shape and out.dtype == x.dtype
    assert jnp.allclose(out, ref, atol=1e-6, rtol=1e-6)

    # Exercise the large-input / multi-block path (and a non-lane-aligned size).
    x_big = jax.random.normal(jax.random.PRNGKey(1), (1_000_003,), dtype=jnp.float32)
    out_big = jax.block_until_ready(gmof(x_big, rho=2.0))
    assert jnp.allclose(out_big, gmof_ref(x_big, rho=2.0), atol=1e-6, rtol=1e-6)

    print("KERNEL_OK")
</pallas_src>

<mosaic_0001>
module attributes {stable_mosaic.version = 11 : i64} {
  func.func @_gmof_kernel(%arg0: i32, %arg1: memref<16x128xf32, #tpu.memory_space<vmem>>, %arg2: memref<16x128xf32, #tpu.memory_space<vmem>>) attributes {dimension_semantics = [#tpu.dimension_semantics<parallel>], iteration_bounds = array<i64: 1>, scalar_prefetch = 0 : i64, scratch_operands = 0 : i64, tpu.core_type = #tpu.core_type<tc>, window_params = [{transform_indices = @transform_0, window_bounds = array<i64: 16, 128>}, {transform_indices = @transform_1, window_bounds = array<i64: 16, 128>}]} {
    %c0 = arith.constant 0 : index
    %c0_0 = arith.constant 0 : index
    %0 = vector.load %arg1[%c0, %c0_0] : memref<16x128xf32, #tpu.memory_space<vmem>>, vector<16x128xf32>
    %1 = arith.mulf %0, %0 : vector<16x128xf32>
    %cst = arith.constant 1.000000e+00 : f32
    %2 = vector.broadcast %cst : f32 to vector<16x128xf32>
    %3 = arith.mulf %2, %1 : vector<16x128xf32>
    %cst_1 = arith.constant 1.000000e+00 : f32
    %4 = vector.broadcast %cst_1 : f32 to vector<16x128xf32>
    %5 = arith.addf %1, %4 : vector<16x128xf32>
    %6 = tpu.reciprocal %5 : vector<16x128xf32> -> vector<16x128xf32>
    %7 = arith.mulf %3, %6 : vector<16x128xf32>
    %c0_2 = arith.constant 0 : index
    %c0_3 = arith.constant 0 : index
    %8 = vector.load %arg2[%c0_2, %c0_3] : memref<16x128xf32, #tpu.memory_space<vmem>>, vector<16x128xf32>
    tpu.vector_store %arg2[%c0_2, %c0_3], %7 {strides = array<i32>} : memref<16x128xf32, #tpu.memory_space<vmem>>, vector<16x128xf32>,
    return
  }
  func.func @transform_0(%arg0: i32) -> (i32, i32) {
    %c0_i32 = arith.constant 0 : i32
    %c0_i32_0 = arith.constant 0 : i32
    return %arg0, %c0_i32 : i32, i32
  }
  func.func @transform_1(%arg0: i32) -> (i32, i32) {
    %c0_i32 = arith.constant 0 : i32
    %c0_i32_0 = arith.constant 0 : i32
    return %arg0, %c0_i32 : i32, i32
  }
}

</mosaic_0001>

<bundles_post_ra>
// kernel: gmof.1
= control target key start
LH: loop header
LB: loop body
LE: loop exit
PB: predicated region body
PF: predicated region fallthrough
CT: control target
= control target key end

     0   :  { %s50_s0 = inlined_call_operand.vmem [shape: f32[16,128], index: 0, kind: input, shape index: {}]   ;;  %s51_s1 = inlined_call_operand.vmem [shape: f32[16,128], index: 1, kind: output, shape index: {}]  }
   0x1   :  { %v8_v0 = vld [vmem:[%s50_s0] sm:$0xff]  ;;  %v9_v1 = vld [vmem:[%s50_s0 + $0x8] sm:$0xff] }
   0x2   :  { %v10_v2 = vmul.f32 %v8_v0, %v8_v0  ;;  %v11_v3 = vmul.f32 %v9_v1, %v9_v1 }
   0x4   :  { %v12_v4 = vadd.f32 1.0, %v10_v2  ;;  %v13_v5 = vadd.f32 1.0, %v11_v3 }
   0x6   :  { %24 = vrcp.f32 %v12_v4 }
   0x7   :  { %26 = vrcp.f32 %v13_v5 }
  0x10   :  { %v25_v6 = vpop.eup %24 }
  0x11   :  { %v27_v7 = vpop.eup %26  ;;  %v16_v8 = vmul.f32 %v25_v6, %v10_v2 }
  0x12   :  { %v17_v9 = vmul.f32 %v27_v7, %v11_v3 }
  0x13   :  { %18 = vst [vmem:[%s51_s1] sm:$0xff] %v16_v8 }
  0x14   :  { %19 = vst [vmem:[%s51_s1 + $0x8] sm:$0xff] %v17_v9 }

</bundles_post_ra>
